<compile_context>
chip_gen: v7x
topology: tpu7x:2x2x1
jax: 0.10.0
libtpu: 0.0.40
codegen_flags: <defaults>
</compile_context>

<pallas_src>
import functools

import jax
import jax.numpy as jnp
from jax.experimental import pallas as pl
from jax.experimental.pallas import tpu as pltpu

EPS = 1e-5          # torch BatchNorm2d default eps
NEG_SLOPE = 0.2     # LeakyReLU slope


def _vmem_capacity_bytes():
    """Best-effort physical VMEM query (fallback: 64 MiB, the v7x size)."""
    try:
        info = pltpu.get_tpu_info()
        return int(getattr(info, "vmem_capacity_bytes", 64 * 1024 * 1024))
    except Exception:
        return 64 * 1024 * 1024


def dcgan_conv_fused_kernel(x_ref, w_ref, b_ref, g_ref, beta_ref,            # inputs
                            o_ref,                                           # output
                            y_buf, sum_ref, sq_ref, scale_ref, shift_ref,    # VMEM scratch
                            *, block_b, m_total):
    """Grid = (phase, image_block).

    phase 0: per image in the block, one (Cout, K16) x (K16, OHW) matmul (+bias);
             accumulate per-channel sum / sum-of-squares in f32; stash y in a
             VMEM-resident bf16 buffer.
    phase 1: first step finalizes BN scale/shift once; every step applies
             y*scale + shift and LeakyReLU(0.2) and writes straight into the
             (N, Cout, OHW) output block (NCHW-compatible, reshape-only glue).
    """
    p = pl.program_id(0)
    nb = pl.program_id(1)
    cout = w_ref.shape[0]

    @pl.when(p == 0)
    def _conv_and_stats():
        @pl.when(nb == 0)
        def _init():
            sum_ref[...] = jnp.zeros((cout, 1), jnp.float32)
            sq_ref[...] = jnp.zeros((cout, 1), jnp.float32)

        w = w_ref[...]
        bias = b_ref[...]
        s_acc = jnp.zeros((cout, 1), jnp.float32)
        q_acc = jnp.zeros((cout, 1), jnp.float32)
        for b in range(block_b):                       # static unroll, B small
            # Single full-K matmul per image; x block is contiguous (no slices).
            y = jnp.dot(w, x_ref[b], preferred_element_type=jnp.float32) + bias
            y_buf[nb * block_b + b] = y.astype(y_buf.dtype)
            s_acc = s_acc + jnp.sum(y, axis=1, keepdims=True)
            q_acc = q_acc + jnp.sum(y * y, axis=1, keepdims=True)
        sum_ref[...] += s_acc
        sq_ref[...] += q_acc

    @pl.when(p == 1)
    def _bn_lrelu():
        @pl.when(nb == 0)
        def _finalize_stats():
            m = jnp.float32(m_total)
            mean = sum_ref[...] / m
            # biased variance (torch BN training fwd); clamp against cancellation.
            var = jnp.maximum(sq_ref[...] / m - mean * mean, 0.0)
            scale = g_ref[...] * jax.lax.rsqrt(var + EPS)
            scale_ref[...] = scale
            shift_ref[...] = beta_ref[...] - mean * scale

        scale = scale_ref[...]
        shift = shift_ref[...]
        for b in range(block_b):
            z = y_buf[nb * block_b + b].astype(jnp.float32) * scale + shift
            o_ref[b] = jnp.where(z >= 0, z, NEG_SLOPE * z).astype(o_ref.dtype)


def dcgan_conv_forward(x, weight, bias, gamma, beta, *, compute_dtype=jnp.bfloat16):
    """x: [N, Cin, H, W] f32; weight: [Cout, Cin, 4, 4] -> [N, Cout, H//2, W//2] f32."""
    N, Cin, H, W = x.shape
    Cout, Cin2, KH, KW = weight.shape
    assert Cin2 == Cin and KH == 4 and KW == 4
    assert H % 2 == 0 and W % 2 == 0, "stride-2 4x4 conv with pad 1 expects even H, W"
    OH, OW = H // 2, W // 2
    OHW = OH * OW
    K16 = 16 * Cin
    M = N * OHW

    # Images folded per grid step (largest divisor of N up to 8).
    BLOCK_B = next(b for b in (8, 4, 2, 1) if N % b == 0)
    NB = N // BLOCK_B

    # ---- wrapper glue: pad + space-to-depth + full tap gather (all 4 taps) ----
    # xs_in[n, k, I*OW+J] with k = (2*bh+bw)*4*Cin + (2*di+dj)*Cin + ci
    #                        = xp[n, ci, 2I + 2bh+di, 2J + 2bw+dj]
    xp = jnp.pad(x, ((0, 0), (0, 0), (1, 1), (1, 1)))                       # (N, Cin, H+2, W+2)
    s2d = xp.reshape(N, Cin, OH + 1, 2, OW + 1, 2).transpose(0, 2, 4, 3, 5, 1)
    taps = [s2d[:, bh:bh + OH, bw:bw + OW] for bh in (0, 1) for bw in (0, 1)]
    xs = jnp.stack(taps, axis=3)                                            # (N, OH, OW, 4, 2, 2, Cin)
    xs_in = xs.reshape(N, OHW, K16).transpose(0, 2, 1).astype(compute_dtype)  # (N, K16, OHW)

    # Weights flattened once to (Cout, K16) in the matching k order.
    w6 = weight.reshape(Cout, Cin, 2, 2, 2, 2)                              # (co, ci, bh, di, bw, dj)
    w16 = w6.transpose(0, 2, 4, 3, 5, 1).reshape(Cout, K16).astype(compute_dtype)

    b_col = bias.reshape(Cout, 1).astype(jnp.float32)
    g_col = gamma.reshape(Cout, 1).astype(jnp.float32)
    be_col = beta.reshape(Cout, 1).astype(jnp.float32)

    kernel = functools.partial(dcgan_conv_fused_kernel, block_b=BLOCK_B, m_total=M)

    # Input index map: fetch image block nb in phase 0; pin to last block in
    # phase 1 (no x re-fetch during the BN pass).
    x_map = lambda p, nb: ((1 - p) * nb + p * (NB - 1), 0, 0)
    # Output index map: pinned to block 0 throughout phase 0 (never written
    # there, and the index does not change until it is actually written in
    # phase 1 step 0), block nb in phase 1 -> each output block DMAs exactly once.
    o_map = lambda p, nb: (p * nb, 0, 0)

    # Explicit VMEM budget: resident bf16 y + double-buffered x/out blocks + weights.
    y_buf_bytes = N * Cout * OHW * 2
    x_blk_bytes = BLOCK_B * K16 * OHW * 2
    o_blk_bytes = BLOCK_B * Cout * OHW * 4
    w_bytes = Cout * K16 * 2
    needed = y_buf_bytes + 2 * (x_blk_bytes + o_blk_bytes + w_bytes) + (4 << 20)
    vmem_limit = int(min(max(needed, 32 << 20), _vmem_capacity_bytes() - (8 << 20)))
    vmem_limit = max(vmem_limit, 16 << 20)

    cost = pl.CostEstimate(
        flops=2 * N * Cout * K16 * OHW,
        transcendentals=0,
        bytes_accessed=N * K16 * OHW * 2 + N * Cout * OHW * 4 + Cout * K16 * 2 + 3 * Cout * 4,
    )

    out3 = pl.pallas_call(
        kernel,
        out_shape=jax.ShapeDtypeStruct((N, Cout, OHW), jnp.float32),
        grid_spec=pltpu.PrefetchScalarGridSpec(
            num_scalar_prefetch=0,
            grid=(2, NB),                                   # (phase, image block)
            in_specs=[
                pl.BlockSpec((BLOCK_B, K16, OHW), x_map),
                pl.BlockSpec((Cout, K16), lambda p, nb: (0, 0)),
                pl.BlockSpec((Cout, 1), lambda p, nb: (0, 0)),
                pl.BlockSpec((Cout, 1), lambda p, nb: (0, 0)),
                pl.BlockSpec((Cout, 1), lambda p, nb: (0, 0)),
            ],
            out_specs=pl.BlockSpec((BLOCK_B, Cout, OHW), o_map),
            scratch_shapes=[
                pltpu.VMEM((N, Cout, OHW), jnp.bfloat16),   # y resident across phases (bf16)
                pltpu.VMEM((Cout, 1), jnp.float32),         # per-channel sum
                pltpu.VMEM((Cout, 1), jnp.float32),         # per-channel sum of squares
                pltpu.VMEM((Cout, 1), jnp.float32),         # BN scale = gamma * rsqrt(var+eps)
                pltpu.VMEM((Cout, 1), jnp.float32),         # BN shift = beta - mean * scale
            ]),
        compiler_params=pltpu.CompilerParams(
            # phase must run sequentially; image axis accumulates stats in phase 0.
            dimension_semantics=("arbitrary", "arbitrary"),
            vmem_limit_bytes=vmem_limit),
        cost_estimate=cost,
    )(xs_in, w16, b_col, g_col, be_col)

    return out3.reshape(N, Cout, OH, OW)                    # free reshape, already NCHW


def reference(x, weight, bias, gamma, beta):
    """Pure-JAX reference matching torch forward (training-mode BN)."""
    y = jax.lax.conv_general_dilated(
        x, weight, window_strides=(2, 2), padding=((1, 1), (1, 1)),
        dimension_numbers=("NCHW", "OIHW", "NCHW"))
    y = y + bias.reshape(1, -1, 1, 1)
    mean = y.mean(axis=(0, 2, 3), keepdims=True)
    var = ((y - mean) ** 2).mean(axis=(0, 2, 3), keepdims=True)
    z = (y - mean) * jax.lax.rsqrt(var + EPS)
    z = z * gamma.reshape(1, -1, 1, 1) + beta.reshape(1, -1, 1, 1)
    return jnp.where(z >= 0, z, NEG_SLOPE * z)


if __name__ == "__main__":
    key = jax.random.PRNGKey(0)
    k1, k2, k3, k4, k5 = jax.random.split(key, 5)

    N, Cin, Cout, H, W = 2, 4, 8, 16, 16
    x = jax.random.normal(k1, (N, Cin, H, W), jnp.float32)
    # deterministic synthetic parameters (shapes per nn.Conv2d / nn.BatchNorm2d)
    weight = 0.05 * jax.random.normal(k2, (Cout, Cin, 4, 4), jnp.float32)
    bias = 0.05 * jax.random.normal(k3, (Cout,), jnp.float32)
    gamma = 1.0 + 0.1 * jax.random.normal(k4, (Cout,), jnp.float32)
    beta = 0.1 * jax.random.normal(k5, (Cout,), jnp.float32)

    out = dcgan_conv_forward(x, weight, bias, gamma, beta)
    out = jax.block_until_ready(out)

    ref = reference(x, weight, bias, gamma, beta)
    assert out.shape == (N, Cout, H // 2, W // 2), out.shape
    # bf16 matmul inputs + bf16 VMEM-resident y with f32 accumulation/finalize:
    # loose tolerance vs the f32 reference.
    err = float(jnp.max(jnp.abs(out - ref)))
    assert jnp.allclose(out, ref, atol=3e-2, rtol=3e-2), f"mismatch vs reference (max abs err {err})"
    print("KERNEL_OK")
</pallas_src>

<mosaic_0001>
module attributes {stable_mosaic.version = 11 : i64} {
  func.func @dcgan_conv_fused_kernel(%arg0: i32, %arg1: i32, %arg2: memref<2x64x64xbf16, #tpu.memory_space<vmem>>, %arg3: memref<8x64xbf16, #tpu.memory_space<vmem>>, %arg4: memref<8x1xf32, #tpu.memory_space<vmem>>, %arg5: memref<8x1xf32, #tpu.memory_space<vmem>>, %arg6: memref<8x1xf32, #tpu.memory_space<vmem>>, %arg7: memref<2x8x64xf32, #tpu.memory_space<vmem>>, %arg8: memref<2x8x64xbf16, #tpu.memory_space<vmem>>, %arg9: memref<8x1xf32, #tpu.memory_space<vmem>>, %arg10: memref<8x1xf32, #tpu.memory_space<vmem>>, %arg11: memref<8x1xf32, #tpu.memory_space<vmem>>, %arg12: memref<8x1xf32, #tpu.memory_space<vmem>>) attributes {dimension_semantics = [#tpu.dimension_semantics<arbitrary>, #tpu.dimension_semantics<arbitrary>], iteration_bounds = array<i64: 2, 1>, scalar_prefetch = 0 : i64, scratch_operands = 5 : i64, tpu.core_type = #tpu.core_type<tc>, window_params = [{transform_indices = @transform_0, window_bounds = array<i64: 2, 64, 64>}, {pipeline_mode = #tpu.pipeline_mode<synchronous>, transform_indices = @transform_1, window_bounds = array<i64: 8, 64>}, {pipeline_mode = #tpu.pipeline_mode<synchronous>, transform_indices = @transform_2, window_bounds = array<i64: 8, 1>}, {pipeline_mode = #tpu.pipeline_mode<synchronous>, transform_indices = @transform_3, window_bounds = array<i64: 8, 1>}, {pipeline_mode = #tpu.pipeline_mode<synchronous>, transform_indices = @transform_4, window_bounds = array<i64: 8, 1>}, {transform_indices = @transform_5, window_bounds = array<i64: 2, 8, 64>}]} {
    %c0_i32 = arith.constant 0 : i32
    %0 = arith.cmpi eq, %arg0, %c0_i32 : i32
    %1 = arith.extui %0 : i1 to i32
    %c0_i32_0 = arith.constant 0 : i32
    %2 = arith.cmpi ne, %1, %c0_i32_0 : i32
    scf.if %2 {
      %c0_i32_2 = arith.constant 0 : i32
      %6 = arith.cmpi eq, %arg1, %c0_i32_2 : i32
      %7 = arith.extui %6 : i1 to i32
      %c0_i32_3 = arith.constant 0 : i32
      %8 = arith.cmpi ne, %7, %c0_i32_3 : i32
      scf.if %8 {
        %cst_34 = arith.constant 0.000000e+00 : f32
        %57 = vector.broadcast %cst_34 : f32 to vector<8x1xf32>
        %c0_35 = arith.constant 0 : index
        %c0_36 = arith.constant 0 : index
        %58 = vector.load %arg9[%c0_35, %c0_36] : memref<8x1xf32, #tpu.memory_space<vmem>>, vector<8x1xf32>
        tpu.vector_store %arg9[%c0_35, %c0_36], %57 {strides = array<i32>} : memref<8x1xf32, #tpu.memory_space<vmem>>, vector<8x1xf32>,
        %cst_37 = arith.constant 0.000000e+00 : f32
        %59 = vector.broadcast %cst_37 : f32 to vector<8x1xf32>
        %c0_38 = arith.constant 0 : index
        %c0_39 = arith.constant 0 : index
        %60 = vector.load %arg10[%c0_38, %c0_39] : memref<8x1xf32, #tpu.memory_space<vmem>>, vector<8x1xf32>
        tpu.vector_store %arg10[%c0_38, %c0_39], %59 {strides = array<i32>} : memref<8x1xf32, #tpu.memory_space<vmem>>, vector<8x1xf32>,
      } else {
      }
      %c0 = arith.constant 0 : index
      %c0_4 = arith.constant 0 : index
      %9 = vector.load %arg3[%c0, %c0_4] : memref<8x64xbf16, #tpu.memory_space<vmem>>, vector<8x64xbf16>
      %c0_5 = arith.constant 0 : index
      %c0_6 = arith.constant 0 : index
      %10 = vector.load %arg4[%c0_5, %c0_6] : memref<8x1xf32, #tpu.memory_space<vmem>>, vector<8x1xf32>
      %cst = arith.constant 0.000000e+00 : f32
      %11 = vector.broadcast %cst : f32 to vector<8x1xf32>
      %cst_7 = arith.constant 0.000000e+00 : f32
      %12 = vector.broadcast %cst_7 : f32 to vector<8x1xf32>
      %c0_8 = arith.constant 0 : index
      %c0_9 = arith.constant 0 : index
      %c0_10 = arith.constant 0 : index
      %13 = vector.load %arg2[%c0_8, %c0_9, %c0_10] : memref<2x64x64xbf16, #tpu.memory_space<vmem>>, vector<1x64x64xbf16>
      %14 = vector.shape_cast %13 : vector<1x64x64xbf16> to vector<64x64xbf16>
      %cst_11 = arith.constant dense<0.000000e+00> : vector<8x64xf32>
      %15 = tpu.matmul %9, %14, %cst_11 {dimension_numbers = #tpu.dot_dimension_numbers<[1], [0], [0], [1], [0, 0, 1, 1], [], []>} : vector<8x64xbf16>, vector<64x64xbf16>, vector<8x64xf32> -> vector<8x64xf32>
      %16 = vector.broadcast %10 : vector<8x1xf32> to vector<8x64xf32>
      %17 = arith.addf %15, %16 : vector<8x64xf32>
      %18 = arith.truncf %17 : vector<8x64xf32> to vector<8x64xbf16>
      %c2_i32 = arith.constant 2 : i32
      %19 = arith.muli %arg1, %c2_i32 : i32
      %c0_i32_12 = arith.constant 0 : i32
      %20 = arith.addi %19, %c0_i32_12 : i32
      %21 = arith.index_cast %20 : i32 to index
      %c0_13 = arith.constant 0 : index
      %c0_14 = arith.constant 0 : index
      %22 = vector.load %arg8[%21, %c0_13, %c0_14] : memref<2x8x64xbf16, #tpu.memory_space<vmem>>, vector<1x8x64xbf16>
      %23 = vector.shape_cast %22 : vector<1x8x64xbf16> to vector<8x64xbf16>
      %24 = vector.shape_cast %18 : vector<8x64xbf16> to vector<1x8x64xbf16>
      tpu.vector_store %arg8[%21, %c0_13, %c0_14], %24 {strides = array<i32>} : memref<2x8x64xbf16, #tpu.memory_space<vmem>>, vector<1x8x64xbf16>,
      %cst_15 = arith.constant dense<0.000000e+00> : vector<8xf32>
      %25 = vector.multi_reduction <add>, %17, %cst_15 [1] : vector<8x64xf32> to vector<8xf32>
      %26 = vector.shape_cast %25 : vector<8xf32> to vector<8x1xf32>
      %27 = arith.addf %11, %26 : vector<8x1xf32>
      %28 = arith.mulf %17, %17 : vector<8x64xf32>
      %cst_16 = arith.constant dense<0.000000e+00> : vector<8xf32>
      %29 = vector.multi_reduction <add>, %28, %cst_16 [1] : vector<8x64xf32> to vector<8xf32>
      %30 = vector.shape_cast %29 : vector<8xf32> to vector<8x1xf32>
      %31 = arith.addf %12, %30 : vector<8x1xf32>
      %c1 = arith.constant 1 : index
      %c0_17 = arith.constant 0 : index
      %c0_18 = arith.constant 0 : index
      %32 = vector.load %arg2[%c1, %c0_17, %c0_18] : memref<2x64x64xbf16, #tpu.memory_space<vmem>>, vector<1x64x64xbf16>
      %33 = vector.shape_cast %32 : vector<1x64x64xbf16> to vector<64x64xbf16>
      %cst_19 = arith.constant dense<0.000000e+00> : vector<8x64xf32>
      %34 = tpu.matmul %9, %33, %cst_19 {dimension_numbers = #tpu.dot_dimension_numbers<[1], [0], [0], [1], [0, 0, 1, 1], [], []>} : vector<8x64xbf16>, vector<64x64xbf16>, vector<8x64xf32> -> vector<8x64xf32>
      %35 = vector.broadcast %10 : vector<8x1xf32> to vector<8x64xf32>
      %36 = arith.addf %34, %35 : vector<8x64xf32>
      %37 = arith.truncf %36 : vector<8x64xf32> to vector<8x64xbf16>
      %c2_i32_20 = arith.constant 2 : i32
      %38 = arith.muli %arg1, %c2_i32_20 : i32
      %c1_i32_21 = arith.constant 1 : i32
      %39 = arith.addi %38, %c1_i32_21 : i32
      %40 = arith.index_cast %39 : i32 to index
      %c0_22 = arith.constant 0 : index
      %c0_23 = arith.constant 0 : index
      %41 = vector.load %arg8[%40, %c0_22, %c0_23] : memref<2x8x64xbf16, #tpu.memory_space<vmem>>, vector<1x8x64xbf16>
      %42 = vector.shape_cast %41 : vector<1x8x64xbf16> to vector<8x64xbf16>
      %43 = vector.shape_cast %37 : vector<8x64xbf16> to vector<1x8x64xbf16>
      tpu.vector_store %arg8[%40, %c0_22, %c0_23], %43 {strides = array<i32>} : memref<2x8x64xbf16, #tpu.memory_space<vmem>>, vector<1x8x64xbf16>,
      %cst_24 = arith.constant dense<0.000000e+00> : vector<8xf32>
      %44 = vector.multi_reduction <add>, %36, %cst_24 [1] : vector<8x64xf32> to vector<8xf32>
      %45 = vector.shape_cast %44 : vector<8xf32> to vector<8x1xf32>
      %46 = arith.addf %27, %45 : vector<8x1xf32>
      %47 = arith.mulf %36, %36 : vector<8x64xf32>
      %cst_25 = arith.constant dense<0.000000e+00> : vector<8xf32>
      %48 = vector.multi_reduction <add>, %47, %cst_25 [1] : vector<8x64xf32> to vector<8xf32>
      %49 = vector.shape_cast %48 : vector<8xf32> to vector<8x1xf32>
      %50 = arith.addf %31, %49 : vector<8x1xf32>
      %c0_26 = arith.constant 0 : index
      %c0_27 = arith.constant 0 : index
      %51 = vector.load %arg9[%c0_26, %c0_27] : memref<8x1xf32, #tpu.memory_space<vmem>>, vector<8x1xf32>
      %52 = arith.addf %51, %46 : vector<8x1xf32>
      %c0_28 = arith.constant 0 : index
      %c0_29 = arith.constant 0 : index
      %53 = vector.load %arg9[%c0_28, %c0_29] : memref<8x1xf32, #tpu.memory_space<vmem>>, vector<8x1xf32>
      tpu.vector_store %arg9[%c0_28, %c0_29], %52 {strides = array<i32>} : memref<8x1xf32, #tpu.memory_space<vmem>>, vector<8x1xf32>,
      %c0_30 = arith.constant 0 : index
      %c0_31 = arith.constant 0 : index
      %54 = vector.load %arg10[%c0_30, %c0_31] : memref<8x1xf32, #tpu.memory_space<vmem>>, vector<8x1xf32>
      %55 = arith.addf %54, %50 : vector<8x1xf32>
      %c0_32 = arith.constant 0 : index
      %c0_33 = arith.constant 0 : index
      %56 = vector.load %arg10[%c0_32, %c0_33] : memref<8x1xf32, #tpu.memory_space<vmem>>, vector<8x1xf32>
      tpu.vector_store %arg10[%c0_32, %c0_33], %55 {strides = array<i32>} : memref<8x1xf32, #tpu.memory_space<vmem>>, vector<8x1xf32>,
    } else {
    }
    %c1_i32 = arith.constant 1 : i32
    %3 = arith.cmpi eq, %arg0, %c1_i32 : i32
    %4 = arith.extui %3 : i1 to i32
    %c0_i32_1 = arith.constant 0 : i32
    %5 = arith.cmpi ne, %4, %c0_i32_1 : i32
    scf.if %5 {
      %c0_i32_2 = arith.constant 0 : i32
      %6 = arith.cmpi eq, %arg1, %c0_i32_2 : i32
      %7 = arith.extui %6 : i1 to i32
      %c0_i32_3 = arith.constant 0 : i32
      %8 = arith.cmpi ne, %7, %c0_i32_3 : i32
      scf.if %8 {
        %c0_22 = arith.constant 0 : index
        %c0_23 = arith.constant 0 : index
        %47 = vector.load %arg9[%c0_22, %c0_23] : memref<8x1xf32, #tpu.memory_space<vmem>>, vector<8x1xf32>
        %cst_24 = arith.constant 1.280000e+02 : f32
        %48 = vector.broadcast %cst_24 : f32 to vector<8x1xf32>
        %49 = arith.divf %47, %48 : vector<8x1xf32>
        %c0_25 = arith.constant 0 : index
        %c0_26 = arith.constant 0 : index
        %50 = vector.load %arg10[%c0_25, %c0_26] : memref<8x1xf32, #tpu.memory_space<vmem>>, vector<8x1xf32>
        %cst_27 = arith.constant 1.280000e+02 : f32
        %51 = vector.broadcast %cst_27 : f32 to vector<8x1xf32>
        %52 = arith.divf %50, %51 : vector<8x1xf32>
        %53 = arith.mulf %49, %49 : vector<8x1xf32>
        %54 = arith.subf %52, %53 : vector<8x1xf32>
        %cst_28 = arith.constant 0.000000e+00 : f32
        %55 = vector.broadcast %cst_28 : f32 to vector<8x1xf32>
        %56 = arith.maximumf %54, %55 : vector<8x1xf32>
        %c0_29 = arith.constant 0 : index
        %c0_30 = arith.constant 0 : index
        %57 = vector.load %arg5[%c0_29, %c0_30] : memref<8x1xf32, #tpu.memory_space<vmem>>, vector<8x1xf32>
        %cst_31 = arith.constant 9.99999974E-6 : f32
        %58 = vector.broadcast %cst_31 : f32 to vector<8x1xf32>
        %59 = arith.addf %56, %58 : vector<8x1xf32>
        %60 = math.rsqrt %59 : vector<8x1xf32>
        %61 = arith.mulf %57, %60 : vector<8x1xf32>
        %c0_32 = arith.constant 0 : index
        %c0_33 = arith.constant 0 : index
        %62 = vector.load %arg11[%c0_32, %c0_33] : memref<8x1xf32, #tpu.memory_space<vmem>>, vector<8x1xf32>
        tpu.vector_store %arg11[%c0_32, %c0_33], %61 {strides = array<i32>} : memref<8x1xf32, #tpu.memory_space<vmem>>, vector<8x1xf32>,
        %c0_34 = arith.constant 0 : index
        %c0_35 = arith.constant 0 : index
        %63 = vector.load %arg6[%c0_34, %c0_35] : memref<8x1xf32, #tpu.memory_space<vmem>>, vector<8x1xf32>
        %64 = arith.mulf %49, %61 : vector<8x1xf32>
        %65 = arith.subf %63, %64 : vector<8x1xf32>
        %c0_36 = arith.constant 0 : index
        %c0_37 = arith.constant 0 : index
        %66 = vector.load %arg12[%c0_36, %c0_37] : memref<8x1xf32, #tpu.memory_space<vmem>>, vector<8x1xf32>
        tpu.vector_store %arg12[%c0_36, %c0_37], %65 {strides = array<i32>} : memref<8x1xf32, #tpu.memory_space<vmem>>, vector<8x1xf32>,
      } else {
      }
      %c0 = arith.constant 0 : index
      %c0_4 = arith.constant 0 : index
      %9 = vector.load %arg11[%c0, %c0_4] : memref<8x1xf32, #tpu.memory_space<vmem>>, vector<8x1xf32>
      %c0_5 = arith.constant 0 : index
      %c0_6 = arith.constant 0 : index
      %10 = vector.load %arg12[%c0_5, %c0_6] : memref<8x1xf32, #tpu.memory_space<vmem>>, vector<8x1xf32>
      %c2_i32 = arith.constant 2 : i32
      %11 = arith.muli %arg1, %c2_i32 : i32
      %c0_i32_7 = arith.constant 0 : i32
      %12 = arith.addi %11, %c0_i32_7 : i32
      %13 = arith.index_cast %12 : i32 to index
      %c0_8 = arith.constant 0 : index
      %c0_9 = arith.constant 0 : index
      %14 = vector.load %arg8[%13, %c0_8, %c0_9] : memref<2x8x64xbf16, #tpu.memory_space<vmem>>, vector<1x8x64xbf16>
      %15 = vector.shape_cast %14 : vector<1x8x64xbf16> to vector<8x64xbf16>
      %16 = arith.extf %15 : vector<8x64xbf16> to vector<8x64xf32>
      %17 = vector.broadcast %9 : vector<8x1xf32> to vector<8x64xf32>
      %18 = arith.mulf %16, %17 : vector<8x64xf32>
      %19 = vector.broadcast %10 : vector<8x1xf32> to vector<8x64xf32>
      %20 = arith.addf %18, %19 : vector<8x64xf32>
      %cst = arith.constant 0.000000e+00 : f32
      %21 = vector.broadcast %cst : f32 to vector<8x64xf32>
      %22 = arith.cmpf oge, %20, %21 : vector<8x64xf32>
      %cst_10 = arith.constant 2.000000e-01 : f32
      %23 = vector.broadcast %cst_10 : f32 to vector<8x64xf32>
      %24 = arith.mulf %23, %20 : vector<8x64xf32>
      %25 = arith.select %22, %20, %24 : vector<8x64xi1>, vector<8x64xf32>
      %c0_11 = arith.constant 0 : index
      %c0_12 = arith.constant 0 : index
      %c0_13 = arith.constant 0 : index
      %26 = vector.load %arg7[%c0_11, %c0_12, %c0_13] : memref<2x8x64xf32, #tpu.memory_space<vmem>>, vector<1x8x64xf32>
      %27 = vector.shape_cast %26 : vector<1x8x64xf32> to vector<8x64xf32>
      %28 = vector.shape_cast %25 : vector<8x64xf32> to vector<1x8x64xf32>
      tpu.vector_store %arg7[%c0_11, %c0_12, %c0_13], %28 {strides = array<i32>} : memref<2x8x64xf32, #tpu.memory_space<vmem>>, vector<1x8x64xf32>,
      %c2_i32_14 = arith.constant 2 : i32
      %29 = arith.muli %arg1, %c2_i32_14 : i32
      %c1_i32_15 = arith.constant 1 : i32
      %30 = arith.addi %29, %c1_i32_15 : i32
      %31 = arith.index_cast %30 : i32 to index
      %c0_16 = arith.constant 0 : index
      %c0_17 = arith.constant 0 : index
      %32 = vector.load %arg8[%31, %c0_16, %c0_17] : memref<2x8x64xbf16, #tpu.memory_space<vmem>>, vector<1x8x64xbf16>
      %33 = vector.shape_cast %32 : vector<1x8x64xbf16> to vector<8x64xbf16>
      %34 = arith.extf %33 : vector<8x64xbf16> to vector<8x64xf32>
      %35 = vector.broadcast %9 : vector<8x1xf32> to vector<8x64xf32>
      %36 = arith.mulf %34, %35 : vector<8x64xf32>
      %37 = vector.broadcast %10 : vector<8x1xf32> to vector<8x64xf32>
      %38 = arith.addf %36, %37 : vector<8x64xf32>
      %cst_18 = arith.constant 0.000000e+00 : f32
      %39 = vector.broadcast %cst_18 : f32 to vector<8x64xf32>
      %40 = arith.cmpf oge, %38, %39 : vector<8x64xf32>
      %cst_19 = arith.constant 2.000000e-01 : f32
      %41 = vector.broadcast %cst_19 : f32 to vector<8x64xf32>
      %42 = arith.mulf %41, %38 : vector<8x64xf32>
      %43 = arith.select %40, %38, %42 : vector<8x64xi1>, vector<8x64xf32>
      %c1 = arith.constant 1 : index
      %c0_20 = arith.constant 0 : index
      %c0_21 = arith.constant 0 : index
      %44 = vector.load %arg7[%c1, %c0_20, %c0_21] : memref<2x8x64xf32, #tpu.memory_space<vmem>>, vector<1x8x64xf32>
      %45 = vector.shape_cast %44 : vector<1x8x64xf32> to vector<8x64xf32>
      %46 = vector.shape_cast %43 : vector<8x64xf32> to vector<1x8x64xf32>
      tpu.vector_store %arg7[%c1, %c0_20, %c0_21], %46 {strides = array<i32>} : memref<2x8x64xf32, #tpu.memory_space<vmem>>, vector<1x8x64xf32>,
    } else {
    }
    return
  }
  func.func @transform_0(%arg0: i32, %arg1: i32) -> (i32, i32, i32) {
    %c1_i32 = arith.constant 1 : i32
    %0 = arith.subi %c1_i32, %arg0 : i32
    %1 = arith.muli %0, %arg1 : i32
    %c0_i32 = arith.constant 0 : i32
    %2 = arith.muli %arg0, %c0_i32 : i32
    %3 = arith.addi %1, %2 : i32
    %c0_i32_0 = arith.constant 0 : i32
    %c0_i32_1 = arith.constant 0 : i32
    %c0_i32_2 = arith.constant 0 : i32
    return %3, %c0_i32_0, %c0_i32_1 : i32, i32, i32
  }
  func.func @transform_1(%arg0: i32, %arg1: i32) -> (i32, i32) {
    %c0_i32 = arith.constant 0 : i32
    %c0_i32_0 = arith.constant 0 : i32
    %c0_i32_1 = arith.constant 0 : i32
    return %c0_i32, %c0_i32_0 : i32, i32
  }
  func.func @transform_2(%arg0: i32, %arg1: i32) -> (i32, i32) {
    %c0_i32 = arith.constant 0 : i32
    %c0_i32_0 = arith.constant 0 : i32
    %c0_i32_1 = arith.constant 0 : i32
    return %c0_i32, %c0_i32_0 : i32, i32
  }
  func.func @transform_3(%arg0: i32, %arg1: i32) -> (i32, i32) {
    %c0_i32 = arith.constant 0 : i32
    %c0_i32_0 = arith.constant 0 : i32
    %c0_i32_1 = arith.constant 0 : i32
    return %c0_i32, %c0_i32_0 : i32, i32
  }
  func.func @transform_4(%arg0: i32, %arg1: i32) -> (i32, i32) {
    %c0_i32 = arith.constant 0 : i32
    %c0_i32_0 = arith.constant 0 : i32
    %c0_i32_1 = arith.constant 0 : i32
    return %c0_i32, %c0_i32_0 : i32, i32
  }
  func.func @transform_5(%arg0: i32, %arg1: i32) -> (i32, i32, i32) {
    %0 = arith.muli %arg0, %arg1 : i32
    %c0_i32 = arith.constant 0 : i32
    %c0_i32_0 = arith.constant 0 : i32
    %c0_i32_1 = arith.constant 0 : i32
    return %0, %c0_i32, %c0_i32_0 : i32, i32, i32
  }
}

</mosaic_0001>

<bundles_post_ra>
// kernel: tpu_custom_call.1
= control target key start
LH: loop header
LB: loop body
LE: loop exit
PB: predicated region body
PF: predicated region fallthrough
CT: control target
= control target key end

     0   :  { %10 = vsyncpa [#allocation8], 0  ;;  %s1023_s0 = inlined_call_operand.hbm [shape: bf16[2,64,64], index: 0, kind: input, shape index: {}]   ;;  %s1024_s1 = inlined_call_operand.vmem [shape: bf16[8,64], index: 1, kind: input, shape index: {}]   ;;  %s1025_s2 = inlined_call_operand.vmem [shape: f32[8,1], index: 2, kind: input, shape index: {}]   ;;  %s1026_s3 = inlined_call_operand.vmem [shape: f32[8,1], index: 3, kind: input, shape index: {}]   ;;  %s1027_s4 = inlined_call_operand.vmem [shape: f32[8,1], index: 4, kind: input, shape index: {}]   ;;  %s1028_s5 = inlined_call_operand.hbm [shape: f32[2,8,64], index: 5, kind: output, shape index: {}]  }
   0x1   :  { %12 = vsyncpa [#allocation8 + $0x1], 0 }
   0x2   :  { %13 = vsyncpa [#allocation9], 0 }
   0x3   :  { %15 = vsyncpa [#allocation9 + $0x1], 0  ;;  %s905_s18 = smov 0   ;;  %s907_s19 = smov 0  }
   0x4   :  { %s909_s20 = smov 0  }
   0x5 LB: > { %s643_s21 = sadd.s32 4294967295, %s863_s20   ;;  %s644_s22 = sadd.s32 4294967294, %s863_s20   ;;  %s863_s20 = sphi %s909_s20, %s21_s20   ;;  %s859_s19 = sphi %s907_s19, %s1034_s19   ;;  %s855_s18 = sphi %s905_s18, %s1033_s18  }
   0x6   : > { %s33_s23 = sadd.s32 1, %s859_s19  ;;  %p727_p2 = scmp.lt.s32.totalorder %s863_s20, 2 }
   0x7   : > { %p35_p1 = scmp.ge.s32.totalorder %s33_s23, 2  ;;  %p728_p3 = scmp.eq.s32.totalorder %s863_s20, 0 }
   0x8   : > { %s865_s25 = smov [#allocation7]   ;;  %s779_s29 = scalar_lea.hbm %s1023_s0, 1024 }
   0x9   : > { %s1036_s23 = smov (%p35_p1, %s33_s23), 0  ;;  %p928_p4 = pnand %p728_p3, %p727_p2 }
   0xa   : > { %s219_s26 = sshll.u32 %s865_s25, 4  ;;  %p780_p6 = scmp.ne.s32.totalorder %s1023_s0, %s779_s29  ;;  %s220_s26 = int_to_ptr.vmem [resolvable:$true] %s219_s26 }
   0xb   : > { %p781_p7 = pneg %p928_p4  ;;  %p786_p10 = scmp.lt.u32.totalorder %s779_s29, %s1023_s0 }
   0xd   : > { %p782_p8 = pnand %p781_p7, %p780_p6 }
   0xf   : > { %p783_p9 = pneg %p782_p8 }
  0x11   : > { %p788_p11 = pnand %p786_p10, %p783_p9 }
  0x13   : > { %791 = shalt.err (!%p788_p11)
}
  0x14   : > { %s792_s9 = scalar_lea.vmem %s220_s26, 1024  ;;  %s799_s10 = scalar_lea.vmem %s220_s26, 2048 }
  0x15   : > { %p793_p12 = scmp.ne.s32.totalorder %s220_s26, %s792_s9  ;;  %p800_p2 = scmp.lt.s32.totalorder %s220_s26, %s220_s26 }
  0x16   : > { %p801_p3 = scmp.lt.s32.totalorder %s799_s10, %s792_s9 }
  0x17   : > { %p795_p13 = pnand %p793_p12, %p781_p7 }
  0x18   : > { %p802_p0 = por %p801_p3, %p800_p2 }
  0x19   : > { %p796_p1 = pneg %p795_p13 }
  0x1b   : > { %p803_p5 = pnand %p802_p0, %p796_p1 }
  0x1d   : > { %806 = shalt.err (!%p803_p5)
}
  0x1e   : > { %s866_s11 = smov 64   ;;  %s867_s12 = smov 4  }
  0x1f   : > { %722 = dma.hbm_to_vmem [thread:$0]  (!%p928_p4), %s1023_s0, 1024, %s220_s26, [#allocation8], %s866_s11, %s866_s11, %s867_s12  }
  0x20   : > { %p227_p6 = scmp.lt.s32.totalorder %s863_s20, 3  ;;  %p1030_p8 = scmp.ge.s32.totalorder %s863_s20, 1 }
  0x22   : > { %p228_p7 = pnand %p1030_p8, %p227_p6 }
  0x23   : > { %p729_p9 = scmp.eq.s32.totalorder (!%p228_p7), %s643_s21, 0 }
  0x24   : > { %231 = sbr.rel (%p228_p7) target bundleno = 631 (0x277), region = 40 }
  0x2b   : > { %846 = dma.done.wait (%p729_p9), [#allocation8], 1024  }
  0x2c   : > { %848 = vsyncadd (%p729_p9), [#allocation8], 4294966272  ;;  %p650_p0 = scmp.ne.s32.totalorder %s855_s18, 0 }
  0x2d   : > { %v768_v0 = vld [vmem:[#allocation7] sm:$0xff] (!%p650_p0)   ;;  %v868_v1 = vmov (!%p650_p0), 0.0   ;;  %v770_v3 = vld [vmem:[#allocation7 + $0x8] sm:$0xff] (!%p650_p0)   ;;  %vm869_vm0 = vmmov (!%p650_p0), 0   ;;  %v870_v5 = vmov (!%p650_p0), 0   ;;  %v772_v6 = vld [vmem:[#allocation7 + $0x10] sm:$0xff] (!%p650_p0)  }
  0x2e   : > { %273 = sbr.rel (%p650_p0) target bundleno = 433 (0x1b1), region = 48  ;;  %687 = vmatprep.subr.bf16.mxu0 (!%p650_p0), %v868_v1  ;;  %699 = vmatprep.subr.bf16.mxu1 (!%p650_p0), %v868_v1  ;;  %v769_v2 = vld [vmem:[#allocation7 + $0x20] sm:$0xff] (!%p650_p0)   ;;  %v771_v4 = vld [vmem:[#allocation7 + $0x28] sm:$0xff] (!%p650_p0)   ;;  %v773_v7 = vld [vmem:[#allocation7 + $0x30] sm:$0xff] (!%p650_p0)   ;;  %vm320_vm1 = vcmask (!%p650_p0), 523264   ;;  %vm368_vm2 = vcmask (!%p650_p0), 519168  }
  0x2f   : > { %688 = vmatpush3.bf16.msra.mxu0 (!%p650_p0), %v768_v0  ;;  %695 = vmatprep.mubr.msk.bf16.mxu0 (!%p650_p0), %vm869_vm0, %v868_v1  ;;  %v282_v8 = vld [vmem:[%s1025_s2] sm:$0xff] (!%p650_p0)  ;;  %vm278_vm3 = vcmask (!%p650_p0), 7168  }
  0x30   : > { %700 = vmatpush3.bf16.msra.mxu1 (!%p650_p0), %v769_v2  ;;  %689 = vmatprep.subr.bf16.mxu0 (!%p650_p0), %v868_v1  ;;  %v774_v9 = vld [vmem:[#allocation7 + $0x18] sm:$0xff] (!%p650_p0)   ;;  %279 = vst.msk [vmem:[#allocation3] sm:$0xff] (!%p650_p0), %vm278_vm3, %v868_v1  ;;  %280 = vst.msk [vmem:[#allocation4] sm:$0xff] (!%p650_p0), %vm278_vm3, %v868_v1 }
  0x31   : > { %701 = vmatprep.subr.bf16.mxu1 (!%p650_p0), %v868_v1  ;;  %707 = vmatprep.mubr.msk.bf16.mxu1 (!%p650_p0), %vm869_vm0, %v868_v1  ;;  %v775_v10 = vld [vmem:[#allocation7 + $0x38] sm:$0xff] (!%p650_p0)  }
  0x32   : > { %767 = vset.pattern.permute.xlu0 (!%p650_p0), %v870_v5  ;;  %v281_v11 = vld [vmem:[%s1024_s1] sm:$0xf] (!%p650_p0) }
  0x33   : > { %690 = vmatpush3.bf16.msra.mxu0 (!%p650_p0), %v770_v3  ;;  %293 = vperm.xlu0 (!%p650_p0), %767, %v282_v8  }
  0x34   : > { %702 = vmatpush3.bf16.msra.mxu1 (!%p650_p0), %v771_v4  ;;  %691 = vmatprep.subr.bf16.mxu0 (!%p650_p0), %v868_v1 }
  0x35   : > { %703 = vmatprep.subr.bf16.mxu1 %v868_v1 }
  0x37   : > { %692 = vmatpush3.bf16.msra.mxu0 %v772_v6  ;;  %v466_v33 = vld [vmem:[#allocation3] sm:$0xff]  ;;  %v470_v38 = vld [vmem:[#allocation4] sm:$0xff] }
  0x38   : > { %704 = vmatpush3.bf16.msra.mxu1 %v773_v7  ;;  %693 = vmatprep.subr.bf16.mxu0 %v868_v1 }
  0x39   : > { %705 = vmatprep.subr.bf16.mxu1 %v868_v1 }
  0x3b   : > { %694 = vmatpush3.bf16.msra.mxu0 %v774_v9 }
  0x3c   : > { %706 = vmatpush3.bf16.msra.mxu1 %v775_v10 }
  0x3e   : > { %696 = vmatmul.mubr.msk.bf16.vlgmr.msra.gmra.mrb[0].mxu0 %vm320_vm1, %v281_v11 }
  0x3f   : > { %708 = vmatmul.mubr.msk.bf16.vlgmr.msra.gmra.mrb[0].mxu1 %vm320_vm1, %v281_v11 }
  0xb2   : > { %v294_v12 = vpop.permute.xlu0 %293 }
 0x111   : > { %v358_v13 = vpop.f32.mrb[0].mxu0 }
 0x112   : > { %v359_v14 = vadd.f32 %v358_v13, %v294_v12  ;;  %v446_v15 = vpop.f32.mrb[0].mxu1  ;;  %v697_v16 = vpop.f32.mrb[1].mxu0 }
 0x113   : > { %v447_v17 = vadd.f32 %v446_v15, %v294_v12  ;;  %v709_v18 = vpop.f32.mrb[1].mxu1  ;;  %v361_v19 = vpop.f32.mrb[2].mxu0 }
 0x114   : > { %v364_v20 = vpack.c.bf16 %v359_v14, %v359_v14  ;;  %v449_v21 = vpop.f32.mrb[2].mxu1  ;;  %v698_v22 = vpop.f32.mrb[3].mxu0  ;;  %v370_v23 = vsel %vm320_vm1, %v359_v14, 0.0  ;;  %v374_v27 = vmul.f32 %v359_v14, %v359_v14 }
 0x115   : > { %v452_v24 = vpack.c.bf16 %v447_v17, %v447_v17  ;;  %v710_v25 = vpop.f32.mrb[3].mxu1  ;;  %v457_v26 = vsel %vm320_vm1, %v447_v17, 0.0  ;;  %371 = vadd.xlane.f32.xlu0 %v370_v23  ;;  %v461_v29 = vmul.f32 %v447_v17, %v447_v17 }
 0x116   : > { %369 = vst.msk [vmem:[#allocation2] sm:$0xf] %vm368_vm2, %v364_v20  ;;  %458 = vadd.xlane.f32.xlu1 %v457_v26  ;;  %v375_v28 = vsel %vm320_vm1, %v374_v27, 0.0 }
 0x117   : > { %669 = vst.msk [vmem:[#allocation2 + $0x4] sm:$0xf] %vm368_vm2, %v452_v24  ;;  %v462_v30 = vsel %vm320_vm1, %v461_v29, 0.0 }
 0x11a   : > { %376 = vadd.xlane.f32.xlu1 %v375_v28 }
 0x11e   : > { %463 = vadd.xlane.f32.xlu1 %v462_v30 }
 0x1a2   : > { %v372_v31 = vpop.xlane.xlu0 %371 }
 0x1a3   : > { %v459_v32 = vpop.xlane.xlu1 %458 }
 0x1a4   : > { %v460_v34 = vadd.f32 %v459_v32, %v372_v31 }
 0x1a6   : > { %v467_v35 = vadd.f32 %v466_v33, %v460_v34 }
 0x1a7   : > { %v377_v36 = vpop.xlane.xlu1 %376 }
 0x1a8   : > { %469 = vst.msk [vmem:[#allocation3] sm:$0xff] %vm278_vm3, %v467_v35 }
 0x1ab   : > { %v464_v37 = vpop.xlane.xlu1 %463 }
 0x1ac   : > { %v465_v39 = vadd.f32 %v464_v37, %v377_v36 }
 0x1ae   : > { %v471_v40 = vadd.f32 %v470_v38, %v465_v39 }
 0x1b0   : > { %472 = vst.msk [vmem:[#allocation4] sm:$0xff] %vm278_vm3, %v471_v40 }
 0x1b1 PF: > { %p670_p4 = scmp.ne.s32.totalorder %s855_s18, 1 }
 0x1b2   : > { %v871_v43 = vmov (!%p670_p4), 0   ;;  %v489_v50 = vld [vmem:[%s1026_s3] sm:$0xff] (!%p670_p4)  ;;  %vm493_vm4 = vcmask (!%p670_p4), 7168   ;;  %vm521_vm5 = vcmask (!%p670_p4), 523264  }
 0x1b3   : > { %476 = sbr.rel (%p670_p4) target bundleno = 607 (0x25f), region = 56  ;;  %v481_v41 = vld [vmem:[#allocation3] sm:$0xff] (!%p670_p4)  ;;  %776 = vset.pattern.permute.xlu0 (!%p670_p4), %v871_v43  ;;  %v495_v53 = vld [vmem:[%s1027_s4] sm:$0xff] (!%p670_p4) }
 0x1b4   : > { %v483_v44 = vmul.f32 (!%p670_p4), 0.0078125, %v481_v41  ;;  %v504_v58 = vld [vmem:[#allocation2] sm:$0xff] (!%p670_p4)  }
 0x1b5   : > { %v505_v59 = vunpack.c.l.bf16 (!%p670_p4), %v504_v58  ;;  %v527_v60 = vunpack.c.h.bf16 (!%p670_p4), %v504_v58 }
 0x1b6   : > { %v486_v46 = vmul.f32 (!%p670_p4), %v483_v44, %v483_v44 }
 0x1b7   : > { %v484_v42 = vld [vmem:[#allocation4] sm:$0xff] (!%p670_p4) }
 0x1b8   : > { %v485_v45 = vmul.f32 (!%p670_p4), 0.0078125, %v484_v42 }
 0x1ba   : > { %v487_v47 = vsub.f32 %v485_v45, %v486_v46 }
 0x1bc   : > { %v488_v48 = vmax.f32 %v487_v47, 0.0 }
 0x1be   : > { %v490_v49 = vadd.f32 1e-05, %v488_v48 }
 0x1c0   : > { %777 = vrsqrt.f32 %v490_v49 }
 0x1ca   : > { %v778_v51 = vpop.eup %777 }
 0x1cb   : > { %v492_v52 = vmul.f32 %v778_v51, %v489_v50 }
 0x1cd   : > { %494 = vst.msk [vmem:[#allocation5] sm:$0xff] %vm493_vm4, %v492_v52  ;;  %v496_v54 = vmul.f32 %v492_v52, %v483_v44 }
 0x1cf   : > { %v497_v55 = vsub.f32 %v495_v53, %v496_v54 }
 0x1d1   : > { %498 = vst.msk [vmem:[#allocation6] sm:$0xff] %vm493_vm4, %v497_v55 }
 0x1d4   : > { %v499_v56 = vld [vmem:[#allocation5] sm:$0xff] }
 0x1d5   : > { %508 = vperm.xlu0 %776, %v499_v56  }
 0x1d8   : > { %v500_v57 = vld [vmem:[#allocation6] sm:$0xff] }
 0x1d9   : > { %514 = vperm.xlu0 %776, %v500_v57  }
 0x254   : > { %v509_v61 = vpop.permute.xlu0 %508 }
 0x255   : > { %v511_v62 = vmul.f32 %v509_v61, %v505_v59  ;;  %v528_v63 = vmul.f32 %v527_v60, %v509_v61 }
 0x258   : > { %v515_v0 = vpop.permute.xlu0 %514 }
 0x259   : > { %v517_v1 = vadd.f32 %v515_v0, %v511_v62  ;;  %v529_v2 = vadd.f32 %v528_v63, %v515_v0 }
 0x25b   : > { %vm518_vm6 = vcmp.ge.f32.partialorder %v517_v1, 0.0  ;;  %v519_v3 = vmul.f32 0.2, %v517_v1  ;;  %vm530_vm7 = vcmp.ge.f32.partialorder %v529_v2, 0.0  ;;  %v531_v4 = vmul.f32 0.2, %v529_v2 }
 0x25d   : > { %v520_v5 = vsel %vm518_vm6, %v517_v1, %v519_v3  ;;  %v532_v6 = vsel %vm530_vm7, %v529_v2, %v531_v4 }
 0x25e   : > { %522 = vst.msk [vmem:[#allocation10] sm:$0xff] %vm521_vm5, %v520_v5  ;;  %672 = vst.msk [vmem:[#allocation10 + $0x8] sm:$0xff] %vm521_vm5, %v532_v6 }
 0x25f PF: > { %p988_p5 = scmp.eq.s32.totalorder %s643_s21, 1  ;;  %s872_s29 = smov [#allocation10]  }
 0x260   : > { %s550_s30 = sshll.u32 %s872_s29, 4  ;;  %s551_s30 = int_to_ptr.vmem [resolvable:$true] %s550_s30 }
 0x261   : > { %s807_s6 = scalar_lea.vmem %s551_s30, 256  ;;  %s813_s7 = scalar_lea.vmem %s551_s30, 512 }
 0x262   : > { %p808_p10 = scmp.ne.s32.totalorder %s551_s30, %s807_s6  ;;  %p814_p13 = scmp.lt.s32.totalorder %s551_s30, %s551_s30 }
 0x263   : > { %p815_p1 = scmp.lt.s32.totalorder %s813_s7, %s807_s6 }
 0x264   : > { %p809_p11 = pnand %p808_p10, %p988_p5 }
 0x265   : > { %p816_p2 = por %p815_p1, %p814_p13 }
 0x266   : > { %p810_p12 = pneg %p809_p11 }
 0x268   : > { %p817_p3 = pnand %p816_p2, %p810_p12 }
 0x26a   : > { %820 = shalt.err (!%p817_p3)
}
 0x26b   : > { %s821_s9 = scalar_lea.hbm %s1028_s5, 256 }
 0x26c   : > { %p822_p6 = scmp.ne.s32.totalorder %s1028_s5, %s821_s9  ;;  %p827_p9 = scmp.lt.u32.totalorder %s821_s9, %s1028_s5 }
 0x26e   : > { %p823_p8 = pnand %p822_p6, %p988_p5 }
 0x270   : > { %p824_p7 = pneg %p823_p8 }
 0x272   : > { %p829_p0 = pnand %p827_p9, %p824_p7 }
 0x274   : > { %832 = shalt.err (!%p829_p0)
}
 0x275   : > { %s873_s14 = smov 128   ;;  %s874_s15 = smov 8  }
 0x276   : > { %716 = dma.vmem_to_hbm [thread:$0]  (%p988_p5), %s551_s30, 256, %s1028_s5, [#allocation9], %s873_s14, %s873_s14, %s874_s15  }
 0x277 PF: > { %p732_p4 = scmp.eq.s32.totalorder %s644_s22, 1  ;;  %p1032_p10 = scmp.ge.s32.totalorder %s863_s20, 2 }
 0x279   : > { %p724_p11 = pnand %p732_p4, %p1032_p10 }
 0x27b   : > { %850 = dma.done.wait (!%p724_p11), [#allocation9], 256  }
 0x27c   : > { %852 = vsyncadd (!%p724_p11), [#allocation9], 4294967040  ;;  %s21_s20 = sadd.s32 1, %s863_s20   ;;  %s1033_s18 = smov %s859_s19 }
 0x27d   : > { %p18_p12 = scmp.ge.s32.totalorder %s21_s20, 4   ;;  %s1034_s19 = smov %s1036_s23 }
 0x27f   :  { %20 = sbr.rel (!%p18_p12) target bundleno = 5 (0x5), region = 107 }
 0x286   :  { %571 = vsyncpa [#allocation8], 1 }
 0x287   :  { %573 = vsyncpa [#allocation8 + $0x1], 1 }
 0x288   :  { %574 = vsyncpa [#allocation9], 1 }
 0x289   :  { %576 = vsyncpa [#allocation9 + $0x1], 1 }

</bundles_post_ra>
